<compile_context>
chip_gen: v7x
topology: tpu7x:2x2x1
jax: 0.10.0
libtpu: 0.0.40
codegen_flags: <defaults>
</compile_context>

<pallas_src>
import functools

import jax
import jax.numpy as jnp
from jax.experimental import pallas as pl
from jax.experimental.pallas import tpu as pltpu


def _round_up(x, m):
    return (x + m - 1) // m * m


def _pick_col_tile(n, target):
    """Largest multiple-of-128 tile <= target that divides n, else n (full dim)."""
    if n <= target:
        return n
    t = (target // 128) * 128
    while t >= 128:
        if n % t == 0:
            return t
        t -= 128
    return n


# ---------------------------------------------------------------------------
# Tiled GEMM + bias kernel (used for the hoisted input-gate GEMMs and the
# vocab projection).  Grid = (row_tiles, col_tiles), both parallel.
# ---------------------------------------------------------------------------
def _matmul_bias_kernel(x_ref, w_ref, b_ref, o_ref):
    o_ref[...] = (jnp.dot(x_ref[...], w_ref[...],
                          preferred_element_type=jnp.float32)
                  + b_ref[...]).astype(o_ref.dtype)


def matmul_bias(x, w, b, out_dtype=jnp.float32, *, row_tile=512, col_tile=2048,
                vmem_limit_bytes=64 * 1024 * 1024):
    R, K = x.shape
    _, N = w.shape
    rt = min(row_tile, _round_up(R, 8))
    r_pad = _round_up(R, rt)
    if r_pad != R:
        x = jnp.pad(x, ((0, r_pad - R), (0, 0)))
    nt = _pick_col_tile(N, col_tile)

    out = pl.pallas_call(
        _matmul_bias_kernel,
        out_shape=jax.ShapeDtypeStruct((r_pad, N), out_dtype),
        grid_spec=pltpu.PrefetchScalarGridSpec(
            num_scalar_prefetch=0,
            grid=(r_pad // rt, N // nt),
            in_specs=[pl.BlockSpec((rt, K), lambda i, j: (i, 0)),
                      pl.BlockSpec((K, nt), lambda i, j: (0, j)),
                      pl.BlockSpec((1, nt), lambda i, j: (0, j))],
            out_specs=pl.BlockSpec((rt, nt), lambda i, j: (i, j))),
        compiler_params=pltpu.CompilerParams(
            dimension_semantics=("parallel", "parallel"),
            vmem_limit_bytes=vmem_limit_bytes),
    )(x, w, b)
    return out[:R] if r_pad != R else out


# ---------------------------------------------------------------------------
# Single-layer GRU recurrence with pre-computed input gates.
# grid = (batch_blocks, T // Tc); the T axis is sequential ("arbitrary"),
# hidden state persists in VMEM scratch.
# ---------------------------------------------------------------------------
def _gru_layer_kernel(hidden_size, t_chunk,
                      gi_ref, len_ref, h0_ref, wh_ref, bhn_ref,
                      hid_ref, hfin_ref, h_scr):
    H = hidden_size
    chunk = pl.program_id(1)

    @pl.when(chunk == 0)
    def _():
        h_scr[...] = h0_ref[...]

    lengths = len_ref[...]          # (BB, 1) int32
    w_h = wh_ref[...]               # (H, 3H), bf16 for MXU
    b_hn = bhn_ref[...]             # (1, H) f32 (only the n-gate hidden bias)
    t0 = chunk * t_chunk

    # Unrolled chunk of Tc timesteps per grid step (amortizes grid overhead and
    # keeps the tiny per-step h @ W_h matmul fed without per-step DMAs).
    for s in range(t_chunk):
        h_prev = h_scr[...]                                        # (BB, H) f32
        gi = gi_ref[s]                                             # (BB, 3H) f32
        gh = jnp.dot(h_prev.astype(w_h.dtype), w_h,
                     preferred_element_type=jnp.float32)           # (BB, 3H)
        r = jax.nn.sigmoid(gi[:, :H] + gh[:, :H])
        z = jax.nn.sigmoid(gi[:, H:2 * H] + gh[:, H:2 * H])
        n = jnp.tanh(gi[:, 2 * H:] + r * (gh[:, 2 * H:] + b_hn))   # b_hn inside r*()
        h_new = n + z * (h_prev - n)                               # == (1-z)*n + z*h
        active = lengths > (t0 + s)                                # (BB, 1) bool
        h_new = jnp.where(active, h_new, h_prev)                   # packed-seq freeze
        h_scr[...] = h_new
        # pad_packed_sequence semantics: zero-fill padded positions
        hid_ref[s] = jnp.where(active, h_new, 0.0).astype(hid_ref.dtype)

    # final hidden written only once, on the last chunk
    @pl.when(chunk == pl.num_programs(1) - 1)
    def _():
        hfin_ref[...] = h_scr[...]


def _gru_layer(gi, lengths2, h0, w_h, b_hn, *, num_batch_blocks, t_chunk,
               hid_dtype, vmem_limit_bytes):
    T, B, H3 = gi.shape
    H = h0.shape[-1]
    NB = num_batch_blocks
    BB = B // NB
    tc = t_chunk

    kernel = functools.partial(_gru_layer_kernel, H, tc)
    hid, h_fin = pl.pallas_call(
        kernel,
        out_shape=(jax.ShapeDtypeStruct((T, B, H), hid_dtype),
                   jax.ShapeDtypeStruct((B, H), jnp.float32)),
        grid_spec=pltpu.PrefetchScalarGridSpec(
            num_scalar_prefetch=0,
            grid=(NB, T // tc),
            in_specs=[
                pl.BlockSpec((tc, BB, H3), lambda b, t: (t, b, 0)),  # gi chunk
                pl.BlockSpec((BB, 1), lambda b, t: (b, 0)),          # lengths
                pl.BlockSpec((BB, H), lambda b, t: (b, 0)),          # h0
                pl.BlockSpec((H, H3), lambda b, t: (0, 0)),          # W_h (resident)
                pl.BlockSpec((1, H), lambda b, t: (0, 0)),           # b_hn
            ],
            out_specs=(pl.BlockSpec((tc, BB, H), lambda b, t: (t, b, 0)),
                       pl.BlockSpec((BB, H), lambda b, t: (b, 0))),
            scratch_shapes=[pltpu.VMEM((BB, H), jnp.float32)]),
        compiler_params=pltpu.CompilerParams(
            dimension_semantics=("parallel", "arbitrary"),
            vmem_limit_bytes=vmem_limit_bytes),
    )(gi, lengths2, h0, w_h, b_hn)
    return hid, h_fin


# ---------------------------------------------------------------------------
# Wrapper — equivalent of RnnPolicy.forward (returns the logits that
# parameterize the Categorical, plus lengths and final hiddens).
# ---------------------------------------------------------------------------
def rnn_policy_forward(tokens, lengths, params, hiddens=None, *,
                       num_batch_blocks=1, t_chunk=8,
                       matmul_dtype=jnp.bfloat16,
                       vmem_limit_bytes=64 * 1024 * 1024):
    """tokens: (T, B) int32, lengths: (B,) int32.
    Returns (logits (T,B,V), lengths, hiddens (L,B,H))."""
    T, B = tokens.shape
    V, E = params["embedding"].shape
    L = params["num_layers"]
    H = params["hidden_size"]
    NB = num_batch_blocks
    assert B % NB == 0

    # largest chunk <= t_chunk that divides T (avoids padding the time axis)
    tc = min(t_chunk, T)
    while T % tc:
        tc -= 1

    lengths2 = lengths.astype(jnp.int32).reshape(B, 1)
    h0 = (jnp.zeros((L, B, H), jnp.float32) if hiddens is None
          else hiddens.astype(jnp.float32))

    # Embedding lookup via XLA gather (padding_idx row is already zero in the
    # table); it feeds straight into the hoisted layer-0 input-gate GEMM.
    x = params["embedding"][tokens.astype(jnp.int32)].astype(matmul_dtype)   # (T,B,E)

    h_finals = []
    for l in range(L):
        w_i, w_h, b_i, b_h = params["gru"][l]
        # Fold b_h's r/z halves into the hoisted input-gate bias; keep only
        # b_hn for the in-kernel n-gate hidden term (matches PyTorch GRU).
        b_fold = jnp.concatenate(
            [b_i[:, :2 * H] + b_h[:, :2 * H], b_i[:, 2 * H:]], axis=1)        # (1, 3H)
        b_hn = b_h[:, 2 * H:]                                                 # (1, H)

        in_sz = x.shape[-1]
        # Hoisted input-gate GEMM over all T*B rows (MXU-saturating).
        gi = matmul_bias(x.reshape(T * B, in_sz), w_i.astype(matmul_dtype),
                         b_fold, out_dtype=jnp.float32,
                         vmem_limit_bytes=vmem_limit_bytes).reshape(T, B, 3 * H)

        hid, h_fin = _gru_layer(gi, lengths2, h0[l], w_h.astype(matmul_dtype),
                                b_hn, num_batch_blocks=NB, t_chunk=tc,
                                hid_dtype=matmul_dtype,
                                vmem_limit_bytes=vmem_limit_bytes)
        h_finals.append(h_fin)
        x = hid   # (T,B,H), narrow dtype -> halves inter-kernel HBM traffic

    h_out = jnp.stack(h_finals)                                               # (L,B,H)

    # Hoisted vocab projection: tiled (rows x vocab) GEMM over all T*B rows.
    logits2d = matmul_bias(x.reshape(T * B, H),
                           params["w_out"].astype(matmul_dtype),
                           params["b_out"], out_dtype=jnp.float32,
                           vmem_limit_bytes=vmem_limit_bytes)
    return logits2d.reshape(T, B, V), lengths, h_out


# ---------------------------------------------------------------------------
# Pure-JAX f32 reference (PyTorch GRU semantics) for verification
# ---------------------------------------------------------------------------
def reference_forward(tokens, lengths, params, hiddens=None):
    T, B = tokens.shape
    L, H = params["num_layers"], params["hidden_size"]
    emb = params["embedding"][tokens]                                  # (T, B, E)
    h = jnp.zeros((L, B, H), jnp.float32) if hiddens is None else hiddens
    outs = []
    for t in range(T):
        x = emb[t]
        mask = (lengths > t)[:, None]
        new_h = []
        for l in range(L):
            w_i, w_h, b_i, b_h = params["gru"][l]
            hp = h[l]
            gi = x @ w_i + b_i
            gh = hp @ w_h + b_h
            r = jax.nn.sigmoid(gi[:, :H] + gh[:, :H])
            z = jax.nn.sigmoid(gi[:, H:2 * H] + gh[:, H:2 * H])
            n = jnp.tanh(gi[:, 2 * H:] + r * gh[:, 2 * H:])
            hn = (1.0 - z) * n + z * hp
            hn = jnp.where(mask, hn, hp)
            new_h.append(hn)
            x = hn
        h = jnp.stack(new_h)
        outs.append(jnp.where(mask, x, 0.0))
    out = jnp.stack(outs)
    logits = out @ params["w_out"] + params["b_out"]
    return logits, h


# ---------------------------------------------------------------------------
# Parameter construction (PyTorch-style init, gate-packed [r|z|n])
# ---------------------------------------------------------------------------
def make_params(key, vocab_size, embedding_size, hidden_size, num_layers, pad_idx):
    keys = jax.random.split(key, 4 + num_layers)
    emb = jax.random.normal(keys[0], (vocab_size, embedding_size), jnp.float32)
    emb = emb.at[pad_idx].set(0.0)                 # nn.Embedding padding_idx row

    k = 1.0 / jnp.sqrt(hidden_size)
    gru = []
    for l in range(num_layers):
        in_sz = embedding_size if l == 0 else hidden_size
        lk = jax.random.split(keys[1 + l], 4)

        def u(kk, shape):
            return jax.random.uniform(kk, shape, jnp.float32, -k, k)

        gru.append((
            u(lk[0], (in_sz, 3 * hidden_size)),        # W_i = [W_ir | W_iz | W_in]^T
            u(lk[1], (hidden_size, 3 * hidden_size)),  # W_h = [W_hr | W_hz | W_hn]^T
            u(lk[2], (1, 3 * hidden_size)),            # b_i
            u(lk[3], (1, 3 * hidden_size)),            # b_h
        ))

    w_out = jax.random.uniform(keys[-2], (hidden_size, vocab_size), jnp.float32, -k, k)
    b_out = jax.random.uniform(keys[-1], (1, vocab_size), jnp.float32, -k, k)
    return {"embedding": emb, "gru": gru, "w_out": w_out, "b_out": b_out,
            "num_layers": num_layers, "hidden_size": hidden_size}


if __name__ == "__main__":
    # small shapes: vocab=16, embed=32, hidden=32, layers=2, seq=8, batch=8
    V, E, H, L = 16, 32, 32, 2
    T, B = 8, 8
    PAD = 0

    key = jax.random.PRNGKey(0)
    kp, kt = jax.random.split(key)
    params = make_params(kp, V, E, H, L, PAD)

    tokens = jax.random.randint(kt, (T, B), 0, V, dtype=jnp.int32)
    lengths = jnp.array([8, 5, 3, 8, 2, 7, 8, 4], dtype=jnp.int32)   # max == T

    ref_logits, ref_h = reference_forward(tokens, lengths, params)

    # 1) exact-math path (f32 MXU operands) — tight check against the reference
    logits32, _, h32 = rnn_policy_forward(tokens, lengths, params,
                                          matmul_dtype=jnp.float32)
    logits32 = jax.block_until_ready(logits32)
    h32 = jax.block_until_ready(h32)
    assert logits32.shape == (T, B, V) and h32.shape == (L, B, H)
    assert jnp.allclose(logits32, ref_logits, atol=1e-4, rtol=1e-4)
    assert jnp.allclose(h32, ref_h, atol=1e-4, rtol=1e-4)

    # 2) performance path (bf16 MXU operands, f32 accumulation) — loose check
    logits, lens_out, hiddens = rnn_policy_forward(tokens, lengths, params)
    logits = jax.block_until_ready(logits)
    hiddens = jax.block_until_ready(hiddens)
    assert logits.shape == (T, B, V) and hiddens.shape == (L, B, H)
    assert jnp.allclose(logits, ref_logits, atol=1e-1, rtol=1e-1)
    assert jnp.allclose(hiddens, ref_h, atol=1e-1, rtol=1e-1)

    print("KERNEL_OK")
</pallas_src>

<mosaic_0001>
module attributes {stable_mosaic.version = 11 : i64} {
  func.func @_matmul_bias_kernel(%arg0: i32, %arg1: i32, %arg2: memref<64x32xf32, #tpu.memory_space<vmem>>, %arg3: memref<32x96xf32, #tpu.memory_space<vmem>>, %arg4: memref<1x96xf32, #tpu.memory_space<vmem>>, %arg5: memref<64x96xf32, #tpu.memory_space<vmem>>) attributes {dimension_semantics = [#tpu.dimension_semantics<parallel>, #tpu.dimension_semantics<parallel>], iteration_bounds = array<i64: 1, 1>, scalar_prefetch = 0 : i64, scratch_operands = 0 : i64, tpu.core_type = #tpu.core_type<tc>, window_params = [{transform_indices = @transform_0, window_bounds = array<i64: 64, 32>}, {transform_indices = @transform_1, window_bounds = array<i64: 32, 96>}, {transform_indices = @transform_2, window_bounds = array<i64: 1, 96>}, {transform_indices = @transform_3, window_bounds = array<i64: 64, 96>}]} {
    %c0 = arith.constant 0 : index
    %c0_0 = arith.constant 0 : index
    %0 = vector.load %arg2[%c0, %c0_0] : memref<64x32xf32, #tpu.memory_space<vmem>>, vector<64x32xf32>
    %c0_1 = arith.constant 0 : index
    %c0_2 = arith.constant 0 : index
    %1 = vector.load %arg3[%c0_1, %c0_2] : memref<32x96xf32, #tpu.memory_space<vmem>>, vector<32x96xf32>
    %cst = arith.constant dense<0.000000e+00> : vector<64x96xf32>
    %2 = tpu.matmul %0, %1, %cst {dimension_numbers = #tpu.dot_dimension_numbers<[1], [0], [0], [1], [0, 0, 1, 1], [], []>} : vector<64x32xf32>, vector<32x96xf32>, vector<64x96xf32> -> vector<64x96xf32>
    %c0_3 = arith.constant 0 : index
    %c0_4 = arith.constant 0 : index
    %3 = vector.load %arg4[%c0_3, %c0_4] : memref<1x96xf32, #tpu.memory_space<vmem>>, vector<1x96xf32>
    %4 = vector.broadcast %3 : vector<1x96xf32> to vector<64x96xf32>
    %5 = arith.addf %2, %4 : vector<64x96xf32>
    %c0_5 = arith.constant 0 : index
    %c0_6 = arith.constant 0 : index
    %6 = vector.load %arg5[%c0_5, %c0_6] : memref<64x96xf32, #tpu.memory_space<vmem>>, vector<64x96xf32>
    tpu.vector_store %arg5[%c0_5, %c0_6], %5 {strides = array<i32>} : memref<64x96xf32, #tpu.memory_space<vmem>>, vector<64x96xf32>,
    return
  }
  func.func @transform_0(%arg0: i32, %arg1: i32) -> (i32, i32) {
    %c0_i32 = arith.constant 0 : i32
    %c0_i32_0 = arith.constant 0 : i32
    return %arg0, %c0_i32 : i32, i32
  }
  func.func @transform_1(%arg0: i32, %arg1: i32) -> (i32, i32) {
    %c0_i32 = arith.constant 0 : i32
    %c0_i32_0 = arith.constant 0 : i32
    return %c0_i32, %arg1 : i32, i32
  }
  func.func @transform_2(%arg0: i32, %arg1: i32) -> (i32, i32) {
    %c0_i32 = arith.constant 0 : i32
    %c0_i32_0 = arith.constant 0 : i32
    return %c0_i32, %arg1 : i32, i32
  }
  func.func @transform_3(%arg0: i32, %arg1: i32) -> (i32, i32) {
    %c0_i32 = arith.constant 0 : i32
    return %arg0, %arg1 : i32, i32
  }
}

</mosaic_0001>

<bundles_post_ra>
// kernel: tpu_custom_call.1
= control target key start
LH: loop header
LB: loop body
LE: loop exit
PB: predicated region body
PF: predicated region fallthrough
CT: control target
= control target key end

     0   :  { %8 = vsyncpa [#allocation3], 0  ;;  %s489_s0 = inlined_call_operand.hbm [shape: f32[64,32], index: 0, kind: input, shape index: {}]   ;;  %s490_s1 = inlined_call_operand.hbm [shape: f32[32,96], index: 1, kind: input, shape index: {}]   ;;  %s491_s2 = inlined_call_operand.hbm [shape: f32[1,96], index: 2, kind: input, shape index: {}]   ;;  %s492_s3 = inlined_call_operand.hbm [shape: f32[64,96], index: 3, kind: output, shape index: {}]  }
   0x1   :  { %9 = vsyncpa [#allocation6], 0 }
   0x2   :  { %10 = vsyncpa [#allocation4], 0  ;;  %s383_s12 = smov [#allocation5]   ;;  %s384_s14 = smov [#allocation2]  }
   0x3   :  { %s28_s13 = sshll.u32 %s383_s12, 4  ;;  %s16_s15 = sshll.u32 %s384_s14, 4  ;;  %s29_s13 = int_to_ptr.vmem [resolvable:$true] %s28_s13  ;;  %s409_s15 = int_to_ptr.vmem [resolvable:$true] %s16_s15 }
   0x4   :  { %s289_s18 = scalar_lea.hbm %s490_s1, 512 }
   0x5   :  { %p290_p0 = scmp.ne.s32.totalorder %s490_s1, %s289_s18  ;;  %p293_p1 = scmp.lt.u32.totalorder %s289_s18, %s490_s1 }
   0x7   :  { %p295_p2 = pnand %p293_p1, %p290_p0 }
   0x9   :  { %298 = shalt.err (!%p295_p2)
}
   0xa   :  { %s299_s23 = scalar_lea.vmem %s29_s13, 512  ;;  %p304_p4 = scmp.lt.s32.totalorder %s29_s13, %s29_s13 }
   0xb   :  { %p300_p3 = scmp.ne.s32.totalorder %s29_s13, %s299_s23  ;;  %p305_p5 = scmp.lt.s32.totalorder %s299_s23, %s299_s23 }
   0xd   :  { %p306_p6 = por %p305_p5, %p304_p4 }
   0xf   :  { %p307_p7 = pnand %p306_p6, %p300_p3 }
  0x11   :  { %310 = shalt.err (!%p307_p7)
}
  0x12   :  { %s385_s24 = smov 128   ;;  %s386_s25 = smov 8  }
  0x13   :  { %34 = dma.hbm_to_vmem [thread:$0]  %s490_s1, 512, %s29_s13, [#allocation6], %s385_s24, %s385_s24, %s386_s25  }
  0x14   :  { %s311_s30 = scalar_lea.hbm %s489_s0, 1024 }
  0x15   :  { %p312_p8 = scmp.ne.s32.totalorder %s489_s0, %s311_s30  ;;  %p315_p9 = scmp.lt.u32.totalorder %s311_s30, %s489_s0 }
  0x17   :  { %p317_p10 = pnand %p315_p9, %p312_p8 }
  0x19   :  { %320 = shalt.err (!%p317_p10)
}
  0x1a   :  { %s321_s8 = scalar_lea.vmem %s409_s15, 1024  ;;  %p326_p12 = scmp.lt.s32.totalorder %s409_s15, %s409_s15 }
  0x1b   :  { %p322_p11 = scmp.ne.s32.totalorder %s409_s15, %s321_s8  ;;  %p327_p13 = scmp.lt.s32.totalorder %s321_s8, %s321_s8 }
  0x1d   :  { %p328_p0 = por %p327_p13, %p326_p12 }
  0x1f   :  { %p329_p1 = pnand %p328_p0, %p322_p11 }
  0x21   :  { %332 = shalt.err (!%p329_p1)
}
  0x22   :  { %22 = dma.hbm_to_vmem [thread:$0]  %s489_s0, 1024, %s409_s15, [#allocation3], %s385_s24, %s385_s24, %s386_s25  }
  0x23   :  { %s387_s10 = smov [#allocation7]   ;;  %s333_s14 = scalar_lea.hbm %s491_s2, 16 }
  0x24   :  { %s41_s11 = sshll.u32 %s387_s10, 4  ;;  %p334_p2 = scmp.ne.s32.totalorder %s491_s2, %s333_s14  ;;  %s42_s11 = int_to_ptr.vmem [resolvable:$true] %s41_s11 }
  0x25   :  { %p337_p3 = scmp.lt.u32.totalorder %s333_s14, %s491_s2 }
  0x27   :  { %p339_p4 = pnand %p337_p3, %p334_p2 }
  0x29   :  { %342 = shalt.err (!%p339_p4)
}
  0x2a   :  { %s343_s20 = scalar_lea.vmem %s42_s11, 16  ;;  %s347_s0 = scalar_lea.vmem %s42_s11, 32 }
  0x2b   :  { %p344_p5 = scmp.ne.s32.totalorder %s42_s11, %s343_s20  ;;  %p348_p6 = scmp.lt.s32.totalorder %s42_s11, %s42_s11 }
  0x2c   :  { %p349_p7 = scmp.lt.s32.totalorder %s347_s0, %s343_s20 }
  0x2e   :  { %p350_p8 = por %p349_p7, %p348_p6 }
  0x30   :  { %p351_p9 = pnand %p350_p8, %p344_p5 }
  0x32   :  { %354 = shalt.err (!%p351_p9)
}
  0x33   :  { %44 = dma.hbm_to_vmem [thread:$0]  %s491_s2, 16, %s42_s11, [#allocation6]  }
  0x34   :  { %377 = dma.done.wait [#allocation3], 1024  }
  0x35   :  { %378 = vsyncadd [#allocation3], 4294966272 }
  0x36   :  { %379 = dma.done.wait [#allocation6], 528  }
  0x37   :  { %380 = vsyncadd [#allocation6], 4294966768  ;;  %vm73_vm0 = vcmask 261120   ;;  %v62_v0 = vld [vmem:[#allocation5] sm:$0xff]  ;;  %v63_v1 = vld [vmem:[#allocation5 + $0x8] sm:$0xff]  ;;  %vm203_vm1 = vcmask 785408  }
  0x38   :  { %v64_v2 = vld [vmem:[#allocation5 + $0x10] sm:$0xff]  ;;  %v271_v3 = vpack.c.bf16 %v63_v1, %v62_v0  ;;  %v65_v4 = vld [vmem:[#allocation5 + $0x18] sm:$0xff]  ;;  %v54_v5 = vld [vmem:[#allocation2] sm:$0xff]  ;;  %s388_s2 = smov [#allocation8]  }
  0x39   :  { %v58_v6 = vld [vmem:[#allocation2 + $0x20] sm:$0xff]  ;;  %v275_v7 = vpack.c.bf16 %v65_v4, %v64_v2  ;;  %259 = vmatprep.mubr.msk.f32.mxu0 %vm73_vm0, %v54_v5  ;;  %v55_v8 = vld [vmem:[#allocation2 + $0x8] sm:$0xff]  ;;  %v56_v10 = vld [vmem:[#allocation2 + $0x10] sm:$0xff]  ;;  %s217_s22 = sshll.u32 %s388_s2, 4  ;;  %s218_s22 = int_to_ptr.vmem [resolvable:$true] %s217_s22 }
  0x3a   :  { %265 = vmatprep.mubr.msk.f32.mxu1 %vm73_vm0, %v58_v6  ;;  %272 = vmatprep.subr.bf16.mxu0 %v271_v3  ;;  %v59_v9 = vld [vmem:[#allocation2 + $0x28] sm:$0xff]  ;;  %v60_v11 = vld [vmem:[#allocation2 + $0x30] sm:$0xff]  ;;  %v57_v12 = vld [vmem:[#allocation2 + $0x18] sm:$0xff]  ;;  %s355_s23 = scalar_lea.vmem %s218_s22, 1024  ;;  %p360_p11 = scmp.lt.s32.totalorder %s218_s22, %s218_s22 }
  0x3b   :  { %279 = vmatprep.subr.bf16.mxu1 %v271_v3  ;;  %274 = vmatpush3.bf16.msra.mxu0 %v271_v3  ;;  %v61_v13 = vld [vmem:[#allocation2 + $0x38] sm:$0xff]  ;;  %v230_v14 = vld [vmem:[#allocation7] ss:$0 sm:$0xff]  ;;  %p356_p10 = scmp.ne.s32.totalorder %s218_s22, %s355_s23  ;;  %p361_p12 = scmp.lt.s32.totalorder %s355_s23, %s355_s23 }
  0x3c   :  { %281 = vmatpush3.bf16.msra.mxu1 %v271_v3  ;;  %276 = vmatprep.subr.bf16.mxu0 %v275_v7 }
  0x3d   :  { %280 = vmatprep.subr.bf16.mxu1 %v275_v7  ;;  %p362_p13 = por %p361_p12, %p360_p11 }
  0x3f   :  { %278 = vmatpush3.bf16.msra.mxu0 %v275_v7  ;;  %p363_p0 = pnand %p362_p13, %p356_p10 }
  0x40   :  { %282 = vmatpush3.bf16.msra.mxu1 %v275_v7 }
  0x42   :  { %260 = vmatmul.mubr.msk.f32.vlgmr.msra.gmra.mrb[0].mxu0 %vm73_vm0, %v55_v8 }
  0x43   :  { %266 = vmatmul.mubr.msk.f32.vlgmr.msra.gmra.mrb[0].mxu1 %vm73_vm0, %v59_v9  ;;  %262 = vmatprep.mubr.msk.f32.mxu0 %vm73_vm0, %v56_v10 }
  0x44   :  { %268 = vmatprep.mubr.msk.f32.mxu1 %vm73_vm0, %v60_v11 }
  0x46   :  { %263 = vmatmul.mubr.msk.f32.gmra.mrb[2].mxu0 %vm73_vm0, %v57_v12 }
  0x47   :  { %269 = vmatmul.mubr.msk.f32.gmra.mrb[2].mxu1 %vm73_vm0, %v61_v13 }
 0x115   :  { %v261_v15 = vpop.f32.mrb[0].mxu0 }
 0x116   :  { %v267_v16 = vpop.f32.mrb[0].mxu1  ;;  %v170_v17 = vadd.f32 %v261_v15, %v230_v14  ;;  %v164_v19 = vpop.f32.mrb[1].mxu0 }
 0x117   :  { %v190_v18 = vadd.f32 %v267_v16, %v230_v14  ;;  %v184_v20 = vpop.f32.mrb[1].mxu1  ;;  %v165_v21 = vadd.f32 %v230_v14, %v164_v19 }
 0x118   :  { %v185_v22 = vadd.f32 %v230_v14, %v184_v20  ;;  %205 = vst.msk [vmem:[#allocation8 + $0x8] sm:$0xff] %vm203_vm1, %v170_v17 }
 0x119   :  { %209 = vst.msk [vmem:[#allocation8 + $0x28] sm:$0xff] %vm203_vm1, %v190_v18  ;;  %204 = vst.msk [vmem:[#allocation8] sm:$0xff] %vm203_vm1, %v165_v21  ;;  %v264_v23 = vpop.f32.mrb[2].mxu0 }
 0x11a   :  { %208 = vst.msk [vmem:[#allocation8 + $0x20] sm:$0xff] %vm203_vm1, %v185_v22  ;;  %v270_v24 = vpop.f32.mrb[2].mxu1  ;;  %v180_v25 = vadd.f32 %v264_v23, %v230_v14  ;;  %v174_v27 = vpop.f32.mrb[3].mxu0 }
 0x11b   :  { %v200_v26 = vadd.f32 %v270_v24, %v230_v14  ;;  %v194_v28 = vpop.f32.mrb[3].mxu1  ;;  %v175_v29 = vadd.f32 %v230_v14, %v174_v27 }
 0x11c   :  { %v195_v30 = vadd.f32 %v230_v14, %v194_v28  ;;  %207 = vst.msk [vmem:[#allocation8 + $0x18] sm:$0xff] %vm203_vm1, %v180_v25 }
 0x11d   :  { %211 = vst.msk [vmem:[#allocation8 + $0x38] sm:$0xff] %vm203_vm1, %v200_v26  ;;  %206 = vst.msk [vmem:[#allocation8 + $0x10] sm:$0xff] %vm203_vm1, %v175_v29 }
 0x11e   :  { %210 = vst.msk [vmem:[#allocation8 + $0x30] sm:$0xff] %vm203_vm1, %v195_v30 }
 0x11f   :  { %366 = shalt.err (!%p363_p0)
}
 0x120   :  { %s367_s28 = scalar_lea.hbm %s492_s3, 1024 }
 0x121   :  { %p368_p1 = scmp.ne.s32.totalorder %s492_s3, %s367_s28  ;;  %p371_p2 = scmp.lt.u32.totalorder %s367_s28, %s492_s3 }
 0x123   :  { %p373_p3 = pnand %p371_p2, %p368_p1 }
 0x125   :  { %376 = shalt.err (!%p373_p3)
}
 0x126   :  { %223 = dma.vmem_to_hbm [thread:$0]  %s218_s22, 1024, %s492_s3, [#allocation4], %s385_s24, %s385_s24, %s386_s25  }
 0x127   :  { %381 = dma.done.wait [#allocation4], 1024  }
 0x128   :  { %382 = vsyncadd [#allocation4], 4294966272 }
 0x129   :  { %227 = vsyncpa [#allocation3], 1 }
 0x12a   :  { %228 = vsyncpa [#allocation6], 1 }
 0x12b   :  { %229 = vsyncpa [#allocation4], 1 }

</bundles_post_ra>
